<compile_context>
chip_gen: v7x
topology: tpu7x:2x2x1
jax: 0.10.0
libtpu: 0.0.40
codegen_flags: <defaults>
</compile_context>

<pallas_src>
import math

import jax
import jax.numpy as jnp
from jax.experimental import pallas as pl
from jax.experimental.pallas import tpu as pltpu


def _round_up(x, m):
    return (x + m - 1) // m * m


def _cdiv(a, b):
    return -(-a // b)


def _make_kernel(n_layers, n_parallel, compute_dtype):
    """One grid step = one batch tile; all P branches via batched matmuls."""

    def kernel(*refs):
        x_ref = refs[0]
        w_refs = refs[1:1 + n_layers]
        b_refs = refs[1 + n_layers:1 + 2 * n_layers]
        out_ref = refs[1 + 2 * n_layers]

        x = x_ref[...]                                        # (B_blk, D0) compute_dtype
        # Same input feeds every branch: replicate once, then every layer is a
        # single batched MXU dot over the P axis (exact FLOPs, no P^2 waste).
        h = jnp.broadcast_to(x, (n_parallel,) + x.shape)      # (P, B_blk, D0)
        for l in range(n_layers):
            w = w_refs[l][...]                                # (P, D_l, D_{l+1}) compute_dtype
            b = b_refs[l][...]                                # (P, 1,   D_{l+1}) f32
            h = jnp.einsum("pbk,pkn->pbn", h.astype(compute_dtype), w,
                           preferred_element_type=jnp.float32) + b
            if l < n_layers - 1:                              # activation between layers only
                h = jnp.maximum(h, 0.0)                       # ReLU, f32 on VPU
        out_ref[...] = h.astype(out_ref.dtype)

    return kernel


def poly_linear_parallel(x, weights, biases, *,
                         compute_dtype=jnp.bfloat16, batch_block=256):
    """
    x:       (B, D0) float32
    weights: list of n_layers arrays, weights[l] shape (P, D_l, D_{l+1}) (pre-transposed)
    biases:  list of n_layers arrays, biases[l]  shape (P, 1, D_{l+1})
    returns: (P, B, D_last) float32 — one MLP output per parallel branch
    """
    n_layers = len(weights)
    P = weights[0].shape[0]
    B, D0 = x.shape
    dims = [D0] + [w.shape[-1] for w in weights]              # per-branch layer widths
    D_last = dims[-1]

    # ---------- parameter packing: pure dtype casts, fully vectorized ----------
    packed_w = [w.astype(compute_dtype) for w in weights]     # (P, D_l, D_{l+1})
    packed_b = [b.astype(jnp.float32) for b in biases]        # (P, 1,   D_{l+1})

    # ---------- batch tiling (>= 2 tiles when possible for v7x megacore) ----------
    B8 = _round_up(B, 8)
    n_tiles = _cdiv(B8, batch_block)
    if B8 >= 16:
        n_tiles = max(n_tiles, 2)
    B_blk = _round_up(_cdiv(B8, n_tiles), 8)
    B_pad = _round_up(B8, B_blk)
    grid = (B_pad // B_blk,)

    x = x.astype(compute_dtype)                # pre-cast: halves streamed input bytes (bf16)
    if B_pad != B:
        x = jnp.pad(x, ((0, B_pad - B), (0, 0)))

    # ---------- specs ----------
    def _resident(shape):
        nd = len(shape)
        # Constant index_map => operand is resident; single-buffer it.
        return pl.BlockSpec(shape, lambda i: (0,) * nd,
                            pipeline_mode=pl.Buffered(1))

    in_specs = [pl.BlockSpec((B_blk, D0), lambda i: (i, 0))]
    in_specs += [_resident(w.shape) for w in packed_w]
    in_specs += [_resident(b.shape) for b in packed_b]
    out_spec = pl.BlockSpec((P, B_blk, D_last), lambda i: (0, i, 0))

    # ---------- explicit scoped-VMEM budget ----------
    param_bytes = sum(a.size * a.dtype.itemsize for a in packed_w + packed_b)
    x_tile_bytes = B_blk * D0 * x.dtype.itemsize              # double-buffered
    out_tile_bytes = P * B_blk * D_last * 4                   # double-buffered
    act_bytes = 2 * max(P * B_blk * d * 4 for d in dims)      # largest live f32 slabs
    vmem_needed = (param_bytes + 2 * x_tile_bytes + 2 * out_tile_bytes
                   + act_bytes + (8 << 20))                   # + compiler scratch headroom
    vmem_limit = int(min(max(vmem_needed, 16 << 20), 64 << 20))

    out = pl.pallas_call(
        _make_kernel(n_layers, P, compute_dtype),
        out_shape=jax.ShapeDtypeStruct((P, B_pad, D_last), jnp.float32),
        grid_spec=pltpu.PrefetchScalarGridSpec(
            num_scalar_prefetch=0,
            grid=grid,
            in_specs=in_specs,
            out_specs=out_spec,
        ),
        compiler_params=pltpu.CompilerParams(
            dimension_semantics=("parallel",),
            vmem_limit_bytes=vmem_limit),
    )(x, *packed_w, *packed_b)

    if B_pad != B:
        out = out[:, :B, :]
    return out


def init_params(key, layer_config, n_parallel):
    """Deterministic PyTorch-nn.Linear-style init: U(-1/sqrt(fan_in), 1/sqrt(fan_in))."""
    weights, biases = [], []
    for d_in, d_out in zip(layer_config[:-1], layer_config[1:]):
        kw, kb, key = jax.random.split(key, 3)
        bound = 1.0 / math.sqrt(d_in)
        # stored pre-transposed as (P, d_in, d_out) so the kernel does h @ W
        w = jax.random.uniform(kw, (n_parallel, d_in, d_out),
                               minval=-bound, maxval=bound, dtype=jnp.float32)
        b = jax.random.uniform(kb, (n_parallel, 1, d_out),
                               minval=-bound, maxval=bound, dtype=jnp.float32)
        weights.append(w)
        biases.append(b)
    return weights, biases


def reference_forward(x, weights, biases):
    """Pure-JAX reference of PolyLinearParallel forward (ReLU between layers)."""
    outs = []
    P = weights[0].shape[0]
    n_layers = len(weights)
    for p in range(P):
        h = x
        for l in range(n_layers):
            h = h @ weights[l][p] + biases[l][p]
            if l < n_layers - 1:
                h = jnp.maximum(h, 0.0)
        outs.append(h)
    return jnp.stack(outs, axis=0)


if __name__ == "__main__":
    layer_config = [32, 64, 16]   # two Linear layers: 32->64 (ReLU), 64->16
    n_parallel = 3
    batch = 13                    # non-multiple of 8: exercises pad + slice + 2 grid tiles

    key = jax.random.PRNGKey(0)
    kx, kp = jax.random.split(key)
    x = jax.random.normal(kx, (batch, layer_config[0]), dtype=jnp.float32)
    weights, biases = init_params(kp, layer_config, n_parallel)

    ref = reference_forward(x, weights, biases)

    # Exact-ish path (f32 MXU operands) -- tight check vs reference.
    out_f32 = poly_linear_parallel(x, weights, biases, compute_dtype=jnp.float32)
    out_f32 = jax.block_until_ready(out_f32)
    assert out_f32.shape == (n_parallel, batch, layer_config[-1])
    assert jnp.allclose(out_f32, ref, atol=1e-4, rtol=1e-4), "f32 mismatch vs reference"

    # Fast path (bf16 MXU operands, f32 accumulate) -- looser tolerance.
    out_bf16 = poly_linear_parallel(x, weights, biases, compute_dtype=jnp.bfloat16)
    out_bf16 = jax.block_until_ready(out_bf16)
    assert out_bf16.shape == (n_parallel, batch, layer_config[-1])
    assert jnp.allclose(out_bf16, ref, atol=5e-2, rtol=5e-2), "bf16 mismatch vs reference"

    print("KERNEL_OK")
</pallas_src>

<mosaic_0001>
module attributes {stable_mosaic.version = 11 : i64} {
  func.func @kernel(%arg0: i32, %arg1: memref<8x32xf32, #tpu.memory_space<vmem>>, %arg2: memref<3x32x64xf32, #tpu.memory_space<vmem>>, %arg3: memref<3x64x16xf32, #tpu.memory_space<vmem>>, %arg4: memref<3x1x64xf32, #tpu.memory_space<vmem>>, %arg5: memref<3x1x16xf32, #tpu.memory_space<vmem>>, %arg6: memref<3x8x16xf32, #tpu.memory_space<vmem>>) attributes {dimension_semantics = [#tpu.dimension_semantics<parallel>], iteration_bounds = array<i64: 2>, scalar_prefetch = 0 : i64, scratch_operands = 0 : i64, tpu.core_type = #tpu.core_type<tc>, window_params = [{transform_indices = @transform_0, window_bounds = array<i64: 8, 32>}, {pipeline_mode = #tpu.pipeline_mode<synchronous>, transform_indices = @transform_1, window_bounds = array<i64: 3, 32, 64>}, {pipeline_mode = #tpu.pipeline_mode<synchronous>, transform_indices = @transform_2, window_bounds = array<i64: 3, 64, 16>}, {pipeline_mode = #tpu.pipeline_mode<synchronous>, transform_indices = @transform_3, window_bounds = array<i64: 3, 1, 64>}, {pipeline_mode = #tpu.pipeline_mode<synchronous>, transform_indices = @transform_4, window_bounds = array<i64: 3, 1, 16>}, {transform_indices = @transform_5, window_bounds = array<i64: 3, 8, 16>}]} {
    %c0 = arith.constant 0 : index
    %c0_0 = arith.constant 0 : index
    %0 = vector.load %arg1[%c0, %c0_0] : memref<8x32xf32, #tpu.memory_space<vmem>>, vector<8x32xf32>
    %1 = vector.shape_cast %0 : vector<8x32xf32> to vector<1x8x32xf32>
    %2 = vector.broadcast %1 : vector<1x8x32xf32> to vector<3x8x32xf32>
    %c0_1 = arith.constant 0 : index
    %c0_2 = arith.constant 0 : index
    %c0_3 = arith.constant 0 : index
    %3 = vector.load %arg2[%c0_1, %c0_2, %c0_3] : memref<3x32x64xf32, #tpu.memory_space<vmem>>, vector<3x32x64xf32>
    %c0_4 = arith.constant 0 : index
    %c0_5 = arith.constant 0 : index
    %c0_6 = arith.constant 0 : index
    %4 = vector.load %arg4[%c0_4, %c0_5, %c0_6] : memref<3x1x64xf32, #tpu.memory_space<vmem>>, vector<3x1x64xf32>
    "tpu.trace_start"() <{level = 10 : i32, message = "pbk,pkn->pbn"}> : () -> ()
    %cst = arith.constant dense<0.000000e+00> : vector<3x8x64xf32>
    %5 = tpu.matmul %2, %3, %cst {dimension_numbers = #tpu.dot_dimension_numbers<[2], [1], [1], [2], [0, 0, 0, 1, 1, 2], [0], [0]>} : vector<3x8x32xf32>, vector<3x32x64xf32>, vector<3x8x64xf32> -> vector<3x8x64xf32>
    "tpu.trace_stop"() : () -> ()
    %6 = vector.broadcast %4 : vector<3x1x64xf32> to vector<3x8x64xf32>
    %7 = arith.addf %5, %6 : vector<3x8x64xf32>
    %cst_7 = arith.constant 0.000000e+00 : f32
    %8 = vector.broadcast %cst_7 : f32 to vector<3x8x64xf32>
    %9 = arith.maximumf %7, %8 : vector<3x8x64xf32>
    %c0_8 = arith.constant 0 : index
    %c0_9 = arith.constant 0 : index
    %c0_10 = arith.constant 0 : index
    %10 = vector.load %arg3[%c0_8, %c0_9, %c0_10] : memref<3x64x16xf32, #tpu.memory_space<vmem>>, vector<3x64x16xf32>
    %c0_11 = arith.constant 0 : index
    %c0_12 = arith.constant 0 : index
    %c0_13 = arith.constant 0 : index
    %11 = vector.load %arg5[%c0_11, %c0_12, %c0_13] : memref<3x1x16xf32, #tpu.memory_space<vmem>>, vector<3x1x16xf32>
    "tpu.trace_start"() <{level = 10 : i32, message = "pbk,pkn->pbn"}> : () -> ()
    %cst_14 = arith.constant dense<0.000000e+00> : vector<3x8x16xf32>
    %12 = tpu.matmul %9, %10, %cst_14 {dimension_numbers = #tpu.dot_dimension_numbers<[2], [1], [1], [2], [0, 0, 0, 1, 1, 2], [0], [0]>} : vector<3x8x64xf32>, vector<3x64x16xf32>, vector<3x8x16xf32> -> vector<3x8x16xf32>
    "tpu.trace_stop"() : () -> ()
    %13 = vector.broadcast %11 : vector<3x1x16xf32> to vector<3x8x16xf32>
    %14 = arith.addf %12, %13 : vector<3x8x16xf32>
    %c0_15 = arith.constant 0 : index
    %c0_16 = arith.constant 0 : index
    %c0_17 = arith.constant 0 : index
    %15 = vector.load %arg6[%c0_15, %c0_16, %c0_17] : memref<3x8x16xf32, #tpu.memory_space<vmem>>, vector<3x8x16xf32>
    tpu.vector_store %arg6[%c0_15, %c0_16, %c0_17], %14 {strides = array<i32>} : memref<3x8x16xf32, #tpu.memory_space<vmem>>, vector<3x8x16xf32>,
    return
  }
  func.func @transform_0(%arg0: i32) -> (i32, i32) {
    %c0_i32 = arith.constant 0 : i32
    %c0_i32_0 = arith.constant 0 : i32
    return %arg0, %c0_i32 : i32, i32
  }
  func.func @transform_1(%arg0: i32) -> (i32, i32, i32) {
    %c0_i32 = arith.constant 0 : i32
    %c0_i32_0 = arith.constant 0 : i32
    %c0_i32_1 = arith.constant 0 : i32
    %c0_i32_2 = arith.constant 0 : i32
    return %c0_i32, %c0_i32_0, %c0_i32_1 : i32, i32, i32
  }
  func.func @transform_2(%arg0: i32) -> (i32, i32, i32) {
    %c0_i32 = arith.constant 0 : i32
    %c0_i32_0 = arith.constant 0 : i32
    %c0_i32_1 = arith.constant 0 : i32
    %c0_i32_2 = arith.constant 0 : i32
    return %c0_i32, %c0_i32_0, %c0_i32_1 : i32, i32, i32
  }
  func.func @transform_3(%arg0: i32) -> (i32, i32, i32) {
    %c0_i32 = arith.constant 0 : i32
    %c0_i32_0 = arith.constant 0 : i32
    %c0_i32_1 = arith.constant 0 : i32
    %c0_i32_2 = arith.constant 0 : i32
    return %c0_i32, %c0_i32_0, %c0_i32_1 : i32, i32, i32
  }
  func.func @transform_4(%arg0: i32) -> (i32, i32, i32) {
    %c0_i32 = arith.constant 0 : i32
    %c0_i32_0 = arith.constant 0 : i32
    %c0_i32_1 = arith.constant 0 : i32
    %c0_i32_2 = arith.constant 0 : i32
    return %c0_i32, %c0_i32_0, %c0_i32_1 : i32, i32, i32
  }
  func.func @transform_5(%arg0: i32) -> (i32, i32, i32) {
    %c0_i32 = arith.constant 0 : i32
    %c0_i32_0 = arith.constant 0 : i32
    %c0_i32_1 = arith.constant 0 : i32
    return %c0_i32, %arg0, %c0_i32_0 : i32, i32, i32
  }
}

</mosaic_0001>

<bundles_post_ra>
// kernel: tpu_custom_call.1
= control target key start
LH: loop header
LB: loop body
LE: loop exit
PB: predicated region body
PF: predicated region fallthrough
CT: control target
= control target key end

     0   :  { %10 = vsyncpa [#allocation3], 0  ;;  %s1436_s0 = inlined_call_operand.vmem [shape: f32[16,32], index: 0, kind: input, shape index: {}]   ;;  %s1437_s1 = inlined_call_operand.vmem [shape: f32[3,32,64], index: 1, kind: input, shape index: {}]   ;;  %s1438_s2 = inlined_call_operand.vmem [shape: f32[3,64,16], index: 2, kind: input, shape index: {}]   ;;  %s1439_s3 = inlined_call_operand.vmem [shape: f32[3,1,64], index: 3, kind: input, shape index: {}]   ;;  %s1440_s4 = inlined_call_operand.vmem [shape: f32[3,1,16], index: 4, kind: input, shape index: {}]   ;;  %s1441_s5 = inlined_call_operand.hbm [shape: f32[3,16,16], index: 5, kind: output, shape index: {}]  }
   0x1   :  { %12 = vsyncpa [#allocation3 + $0x1], 0  ;;  %s1168_s18 = smov 0   ;;  %s1170_s19 = smov 0  }
   0x2   :  { %s1172_s20 = smov 0   ;;  %s1174_s21 = smov 0  }
   0x3 LB: > { %s1189_s22 = sadd.s32 4294967295, %s1129_s21   ;;  %s815_s23 = sadd.s32 4294967294, %s1129_s21   ;;  %s1129_s21 = sphi %s1174_s21, %s1447_s21   ;;  %s1125_s20 = sphi %s1172_s20, %s1446_s20   ;;  %s1121_s19 = sphi %s1170_s19, %s1445_s19   ;;  %s1117_s18 = sphi %s1168_s18, %s1444_s18  }
   0x4   : > { %s1193_s24 = sadd.s32 1, %s1129_s21   ;;  %s135_s25 = sadd.s32 1, %s1125_s20 }
   0x5   : > { %s132_s26 = ssub.s32 %s1129_s21, %s1193_s24  ;;  %p145_p0 = scmp.ne.s32.totalorder %s1125_s20, %s1121_s19 }
   0x6   : > { %p133_p1 = scmp.eq.s32.totalorder %s132_s26, 0  ;;  %p146_p2 = scmp.eq.s32.totalorder %s1189_s22, 1 }
   0x7   : > { %p151_p3 = scmp.ne.s32.totalorder %s1121_s19, %s1117_s18  ;;  %p152_p4 = scmp.eq.s32.totalorder %s815_s23, 1 }
   0x8   : > { %s1204_s27 = scalar_select %p133_p1, %s1125_s20, %s135_s25  }
   0x9   : > { %p1206_p5 = por %p146_p2, %p145_p0  ;;  %p1210_p6 = por %p152_p4, %p151_p3 }
   0xa   : > { %p818_p7 = scmp.ge.s32.totalorder %s1129_s21, 1  ;;  %p189_p8 = scmp.lt.s32.totalorder %s1129_s21, 3 }
   0xc   : > { %p190_p9 = pnand %p818_p7, %p189_p8 }
   0xd   : > { %v221_v0 = vld [vmem:[%s1437_s1] sm:$0xff] (!%p190_p9)  ;;  %v222_v1 = vld [vmem:[%s1437_s1 + $0x8] sm:$0xff] (!%p190_p9)  ;;  %v223_v2 = vld [vmem:[%s1437_s1 + $0x10] sm:$0xff] (!%p190_p9)  ;;  %v1131_v3 = vmov (!%p190_p9), 0.0|0.0   ;;  %vm1132_vm0 = vmmov (!%p190_p9), 0   ;;  %v1133_v6 = vmov (!%p190_p9), 0.0  }
   0xe   : > { %193 = sbr.rel (%p190_p9) target bundleno = 488 (0x1e8), region = 40  ;;  %967 = vmatprep.subr.bf16.mxu0 (!%p190_p9), %v1131_v3  ;;  %v968_v4 = vpack.c.bf16 (!%p190_p9), %v222_v1, %v221_v0  ;;  %v224_v5 = vld [vmem:[%s1437_s1 + $0x18] sm:$0xff] (!%p190_p9)  ;;  %885 = vmatprep.mubr.msk.f32.mxu0 (!%p190_p9), %vm1132_vm0, %v1133_v6  ;;  %p216_p10 = scmp.lt.s32.totalorder (!%p190_p9), %s1189_s22, 1  ;;  %v225_v7 = vld [vmem:[%s1437_s1 + $0x20] sm:$0xff] (!%p190_p9)  ;;  %v226_v8 = vld [vmem:[%s1437_s1 + $0x28] sm:$0xff] (!%p190_p9)  ;;  %vm254_vm1 = vcmask (!%p190_p9), 261120  }
   0xf   : > { %973 = vmatprep.subr.bf16.mxu1 (!%p190_p9), %v1131_v3  ;;  %v974_v9 = vpack.c.bf16 (!%p190_p9), %v226_v8, %v225_v7  ;;  %v227_v10 = vld [vmem:[%s1437_s1 + $0x30] sm:$0xff] (!%p190_p9)  ;;  %896 = vmatprep.mubr.msk.f32.mxu1 (!%p190_p9), %vm1132_vm0, %v1133_v6  ;;  %v971_v11 = vpack.c.bf16 (!%p190_p9), %v224_v5, %v223_v2  ;;  %v228_v12 = vld [vmem:[%s1437_s1 + $0x38] sm:$0xff] (!%p190_p9)  ;;  %v229_v13 = vld [vmem:[%s1437_s1 + $0x40] sm:$0xff] (!%p190_p9)  ;;  %vm516_vm2 = vcmask (!%p190_p9), 523264   ;;  %s213_s8 = sand.u32 (!%p190_p9), 1, %s1121_s19   ;;  %vm736_vm3 = vcmask (!%p190_p9), 130048  }
  0x10   : > { %969 = vmatpush3.bf16.msra.mxu0 (!%p190_p9), %v968_v4  ;;  %v230_v14 = vld [vmem:[%s1437_s1 + $0x48] sm:$0xff] (!%p190_p9)  ;;  %v977_v15 = vpack.c.bf16 (!%p190_p9), %v228_v12, %v227_v10  ;;  %v471_v16 = vld [vmem:[%s1438_s2] sm:$0xff] (!%p190_p9)  ;;  %v231_v20 = vld [vmem:[%s1437_s1 + $0x50] sm:$0xff] (!%p190_p9)  ;;  %s1021_s9 = smul.u32 (!%p190_p9), 24, %s213_s8  ;;  %s832_s16 = sshll.u32 (!%p190_p9), %s1189_s22, 7 }
  0x11   : > { %970 = vmatprep.subr.bf16.mxu0 (!%p190_p9), %v1131_v3  ;;  %975 = vmatpush3.bf16.msra.mxu1 (!%p190_p9), %v974_v9  ;;  %v472_v17 = vld [vmem:[%s1438_s2 + $0x8] sm:$0xff] (!%p190_p9)  ;;  %v980_v19 = vpack.c.bf16 (!%p190_p9), %v230_v14, %v229_v13  ;;  %v232_v21 = vld [vmem:[%s1437_s1 + $0x58] sm:$0xff] (!%p190_p9)  ;;  %v473_v23 = vld [vmem:[%s1438_s2 + $0x10] sm:$0xff] (!%p190_p9)  ;;  %s1392_s30 = scalar_lea.hbm (!%p190_p9), %s1441_s5, %s832_s16  ;;  %s1134_s7 = smov (!%p190_p9), [#allocation2]  }
  0x12   : > { %976 = vmatprep.subr.bf16.mxu1 (!%p190_p9), %v1131_v3  ;;  %v986_v22 = vpack.c.bf16 (!%p190_p9), %v472_v17, %v471_v16  ;;  %v474_v24 = vld [vmem:[%s1438_s2 + $0x18] sm:$0xff] (!%p190_p9)  ;;  %v983_v25 = vpack.c.bf16 (!%p190_p9), %v232_v21, %v231_v20  ;;  %v475_v27 = vld [vmem:[%s1438_s2 + $0x20] sm:$0xff] (!%p190_p9)  ;;  %v476_v28 = vld [vmem:[%s1438_s2 + $0x28] sm:$0xff] (!%p190_p9)  ;;  %s215_s14 = scalar_lea.vmem (!%p190_p9), [#allocation2], %s1021_s9  ;;  %s1071_s9 = sshll.u32 (!%p190_p9), %s1134_s7, 4  ;;  %s1072_s9 = int_to_ptr.vmem [resolvable:$false] %s1071_s9 }
  0x13   : > { %v989_v26 = vpack.c.bf16 (!%p190_p9), %v474_v24, %v473_v23  ;;  %v992_v29 = vpack.c.bf16 (!%p190_p9), %v476_v28, %v475_v27  ;;  %v477_v30 = vld [vmem:[%s1438_s2 + $0x30] sm:$0xff] (!%p190_p9)  ;;  %v478_v31 = vld [vmem:[%s1438_s2 + $0x38] sm:$0xff] (!%p190_p9)  ;;  %v479_v33 = vld [vmem:[%s1438_s2 + $0x40] sm:$0xff] (!%p190_p9)  ;;  %s753_s15 = sshll.u32 (!%p190_p9), %s215_s14, 4  ;;  %s1387_s15 = int_to_ptr.vmem [resolvable:$true] %s753_s15 }
  0x14   : > { %972 = vmatpush3.bf16.msra.mxu0 (!%p190_p9), %v971_v11  ;;  %v995_v32 = vpack.c.bf16 (!%p190_p9), %v478_v31, %v477_v30  ;;  %v480_v34 = vld [vmem:[%s1438_s2 + $0x48] sm:$0xff] (!%p190_p9)  ;;  %v481_v36 = vld [vmem:[%s1438_s2 + $0x50] sm:$0xff] (!%p190_p9)  ;;  %v482_v37 = vld [vmem:[%s1438_s2 + $0x58] sm:$0xff] (!%p190_p9)  ;;  %s1067_s6 = scalar_lea.vmem (!%p190_p9), %s1387_s15, 384  ;;  %p1074_p0 = scmp.lt.s32.totalorder (!%p190_p9), %s1387_s15, %s1072_s9 }
  0x15   : > { %s217_s25 = scalar_select %p216_p10, %s1189_s22, 1  ;;  %979 = vmatprep.subr.bf16.mxu0 %v1131_v3  ;;  %978 = vmatpush3.bf16.msra.mxu1 %v977_v15  ;;  %v998_v35 = vpack.c.bf16 %v480_v34, %v479_v33  ;;  %v1001_v38 = vpack.c.bf16 %v482_v37, %v481_v36  ;;  %v483_v39 = vld [vmem:[%s1438_s2 + $0x60] sm:$0xff]  ;;  %v484_v40 = vld [vmem:[%s1438_s2 + $0x68] sm:$0xff]  ;;  %v485_v42 = vld [vmem:[%s1438_s2 + $0x70] sm:$0xff] }
  0x16   : > { %985 = vmatprep.subr.bf16.mxu1 %v1131_v3  ;;  %v1004_v41 = vpack.c.bf16 %v484_v40, %v483_v39  ;;  %v486_v43 = vld [vmem:[%s1438_s2 + $0x78] sm:$0xff]  ;;  %v820_v45 = vld [vmem:[%s1439_s3] ss:$0 sm:$0xff]  ;;  %v488_v47 = vld [vmem:[%s1438_s2 + $0x88] sm:$0xff]  ;;  %s1395_s22 = scalar_lea.sflag [#allocation3], %s213_s8  ;;  %p1068_p11 = scmp.ne.s32.totalorder %s1387_s15, %s1067_s6 }
  0x17   : > { %s819_s10 = sshll.u32 %s217_s25, 3  ;;  %v1007_v44 = vpack.c.bf16 %v486_v43, %v485_v42  ;;  %v487_v46 = vld [vmem:[%s1438_s2 + $0x80] sm:$0xff]  ;;  %v489_v55 = vld [vmem:[%s1438_s2 + $0x90] sm:$0xff]  ;;  %v490_v56 = vld [vmem:[%s1438_s2 + $0x98] sm:$0xff] }
  0x18   : > { %s219_s13 = scalar_lea.vmem %s1436_s0, %s819_s10  ;;  %v821_v49 = vld [vmem:[%s1439_s3 + $0x1] ss:$0 sm:$0xff]  ;;  %v1010_v52 = vpack.c.bf16 %v488_v47, %v487_v46  ;;  %v1013_v60 = vpack.c.bf16 %v490_v56, %v489_v55  ;;  %v492_v62 = vld [vmem:[%s1438_s2 + $0xa8] sm:$0xff]  ;;  %v822_v2 = vld [vmem:[%s1439_s3 + $0x2] ss:$0 sm:$0xff]  ;;  %p1069_p12 = pnand %p1068_p11, %p1206_p5 }
  0x19   : > { %v220_v18 = vld [vmem:[%s219_s13] sm:$0xff]  ;;  %v493_v4 = vld [vmem:[%s1438_s2 + $0xb0] sm:$0xff]  ;;  %v494_v5 = vld [vmem:[%s1438_s2 + $0xb8] sm:$0xff]  ;;  %s1073_s10 = scalar_lea.vmem %s1072_s9, 768 }
  0x1a   : > { %886 = vmatmul.mubr.msk.f32.vlgmr.msra.gmra.mrb[0].mxu0 %vm254_vm1, %v220_v18  ;;  %897 = vmatmul.mubr.msk.f32.vlgmr.msra.gmra.mrb[0].mxu1 %vm254_vm1, %v220_v18  ;;  %v491_v61 = vld [vmem:[%s1438_s2 + $0xa0] sm:$0xff]  ;;  %v1019_v7 = vpack.c.bf16 %v494_v5, %v493_v4  ;;  %p1070_p13 = pneg %p1069_p12  ;;  %p1075_p1 = scmp.lt.s32.totalorder %s1073_s10, %s1067_s6 }
  0x1b   : > { %981 = vmatpush3.bf16.msra.mxu0 %v980_v19  ;;  %907 = vmatprep.mubr.msk.f32.mxu0 %vm1132_vm0, %v1133_v6  ;;  %v1016_v1 = vpack.c.bf16 %v492_v62, %v491_v61  ;;  %v826_v9 = vld [vmem:[%s1440_s4] ss:$0 sm:$0xff]  ;;  %v827_v11 = vld [vmem:[%s1440_s4 + $0x1] ss:$0 sm:$0xff]  ;;  %v828_v16 = vld [vmem:[%s1440_s4 + $0x2] ss:$0 sm:$0xff] }
  0x1c   : > { %982 = vmatprep.subr.bf16.mxu0 %v1131_v3  ;;  %987 = vmatpush3.bf16.msra.mxu1 %v986_v22  ;;  %p1076_p2 = por %p1075_p1, %p1074_p0 }
  0x1d   : > { %926 = vmatprep.mubr.msk.f32.mxu1 %vm1132_vm0, %v1133_v6  ;;  %988 = vmatprep.subr.bf16.mxu1 %v1131_v3 }
  0x1e   : > { %p1077_p3 = pnand %p1076_p2, %p1070_p13 }
  0x1f   : > { %984 = vmatpush3.bf16.msra.mxu0 %v983_v25 }
  0x20   : > { %997 = vmatprep.subr.bf16.mxu0 %v1131_v3  ;;  %990 = vmatpush3.bf16.msra.mxu1 %v989_v26 }
  0x21   : > { %991 = vmatprep.subr.bf16.mxu1 %v1131_v3 }
  0x22   : > { %908 = vmatmul.mubr.msk.f32.vlgmr.msra.gmra.mrb[2].mxu0 %vm254_vm1, %v220_v18 }
  0x23   : > { %945 = vmatprep.mubr.msk.f32.mxu0 %vm1132_vm0, %v1133_v6  ;;  %999 = vmatpush3.bf16.msra.mxu0 %v998_v35 }
  0x24   : > { %993 = vmatpush3.bf16.msra.mxu1 %v992_v29  ;;  %1000 = vmatprep.subr.bf16.mxu0 %v1131_v3 }
  0x25   : > { %994 = vmatprep.subr.bf16.mxu1 %v1131_v3 }
  0x27   : > { %1002 = vmatpush3.bf16.msra.mxu0 %v1001_v38 }
  0x28   : > { %996 = vmatpush3.bf16.msra.mxu1 %v995_v32  ;;  %1003 = vmatprep.subr.bf16.mxu0 %v1131_v3 }
  0x29   : > { %1009 = vmatprep.subr.bf16.mxu1 %v1131_v3 }
  0x2b   : > { %1005 = vmatpush3.bf16.msra.mxu0 %v1004_v41 }
  0x2c   : > { %1006 = vmatprep.subr.bf16.mxu0 %v1131_v3 }
  0x2f   : > { %1008 = vmatpush3.bf16.msra.mxu0 %v1007_v44 }
  0xed   : > { %v324_v48 = vpop.f32.mrb[0].mxu0  ;;  %v394_v53 = vpop.f32.mrb[0].mxu1 }
  0xee   : > { %v325_v50 = vadd.f32 %v820_v45, %v324_v48  ;;  %v887_v51 = vpop.f32.mrb[1].mxu0  ;;  %v395_v57 = vadd.f32 %v821_v49, %v394_v53  ;;  %v898_v58 = vpop.f32.mrb[1].mxu1 }
  0xf0   : > { %v468_v54 = vmax.f32 %v325_v50, 0.0  ;;  %v469_v59 = vmax.f32 %v395_v57, 0.0 }
  0xf2   : > { %927 = vmatmul.mubr.msk.f32.vlgmr.msra.gmra.mrb[2].mxu1 %vm516_vm2, %v468_v54  ;;  %946 = vmatmul.mubr.msk.f32.vlgmr.msra.gmra.mrb[4].mxu0 %vm516_vm2, %v469_v59 }
  0xf3   : > { %1011 = vmatpush3.bf16.msra.mxu1 %v1010_v52  ;;  %964 = vmatprep.mubr.msk.f32.mxu1 %vm1132_vm0, %v1133_v6 }
  0xf4   : > { %1012 = vmatprep.subr.bf16.mxu1 %v1131_v3 }
  0xf5   : > { %v464_v63 = vpop.f32.mrb[2].mxu0 }
  0xf6   : > { %v909_v0 = vpop.f32.mrb[3].mxu0  ;;  %v465_v6 = vadd.f32 %v822_v2, %v464_v63 }
  0xf7   : > { %1014 = vmatpush3.bf16.msra.mxu1 %v1013_v60 }
  0xf8   : > { %1015 = vmatprep.subr.bf16.mxu1 %v1131_v3  ;;  %v470_v8 = vmax.f32 %v465_v6, 0.0 }
  0xfb   : > { %1017 = vmatpush3.bf16.msra.mxu1 %v1016_v1 }
  0xfc   : > { %1018 = vmatprep.subr.bf16.mxu1 %v1131_v3 }
  0xff   : > { %1020 = vmatpush3.bf16.msra.mxu1 %v1019_v7 }
 0x102   : > { %965 = vmatmul.mubr.msk.f32.vlgmr.msra.gmra.mrb[4].mxu1 %vm516_vm2, %v470_v8 }
 0x1c5   : > { %v586_v10 = vpop.f32.mrb[2].mxu1  ;;  %v659_v3 = vpop.f32.mrb[4].mxu0 }
 0x1c6   : > { %v587_v12 = vadd.f32 %v826_v9, %v586_v10  ;;  %v928_v13 = vpop.f32.mrb[3].mxu1  ;;  %v660_v14 = vadd.f32 %v827_v11, %v659_v3  ;;  %v947_v15 = vpop.f32.mrb[5].mxu0 }
 0x1c8   : > { %737 = vst.msk [vmem:[%s215_s14] sm:$0xff] %vm736_vm3, %v587_v12  ;;  %738 = vst.msk [vmem:[%s215_s14 + $0x8] sm:$0xff] %vm736_vm3, %v660_v14 }
 0x1d5   : > { %v732_v17 = vpop.f32.mrb[4].mxu1 }
 0x1d6   : > { %v733_v18 = vadd.f32 %v828_v16, %v732_v17  ;;  %v966_v19 = vpop.f32.mrb[5].mxu1 }
 0x1d8   : > { %739 = vst.msk [vmem:[%s215_s14 + $0x10] sm:$0xff] %vm736_vm3, %v733_v18 }
 0x1d9   : > { %1080 = shalt.err (!%p1077_p3)
}
 0x1da   : > { %s1081_s8 = scalar_lea.hbm %s1392_s30, 384  ;;  %s1085_s13 = scalar_lea.hbm %s1441_s5, 768 }
 0x1db   : > { %p1082_p4 = scmp.ne.s32.totalorder %s1392_s30, %s1081_s8  ;;  %p1086_p9 = scmp.lt.u32.totalorder %s1392_s30, %s1441_s5 }
 0x1dc   : > { %p1087_p10 = scmp.lt.u32.totalorder %s1085_s13, %s1081_s8  ;;  %p1089_p12 = scmp.lt.u32.totalorder %s1081_s8, %s1392_s30 }
 0x1dd   : > { %p1083_p7 = pnand %p1082_p4, %p1206_p5 }
 0x1de   : > { %p1088_p11 = por %p1087_p10, %p1086_p9 }
 0x1df   : > { %p1084_p8 = pneg %p1083_p7 }
 0x1e0   : > { %p1090_p13 = por %p1089_p12, %p1088_p11 }
 0x1e2   : > { %p1091_p0 = pnand %p1090_p13, %p1084_p8 }
 0x1e4   : > { %1094 = shalt.err (!%p1091_p0)
}
 0x1e5   : > { %s1135_s17 = smov 128   ;;  %s1136_s23 = smov 256  }
 0x1e6   : > { %s1137_s25 = smov 8  }
 0x1e7   : > { %1022 = dma.vmem_to_hbm [thread:$0]  (%p1206_p5), %s1387_s15, 384, %s1392_s30, %s1395_s22, %s1135_s17, %s1136_s23, %s1137_s25  }
 0x1e8 PF: > { %p1028_p1 = scmp.ge.s32.totalorder %s1129_s21, 2  ;;  %s768_s26 = sand.u32 1, %s1117_s18  }
 0x1e9   : > { %s769_s6 = scalar_lea.sflag [#allocation3], %s768_s26 }
 0x1ea   : > { %p1025_p2 = pnand %p1028_p1, %p1210_p6 }
 0x1ec   : > { %1112 = dma.done.wait (!%p1025_p2), %s769_s6, 384  }
 0x1ed   : > { %1114 = vsyncadd (!%p1025_p2), %s769_s6, 4294966912  ;;  %p15_p3 = scmp.ge.s32.totalorder %s1193_s24, 4   ;;  %s1444_s18 = smov %s1121_s19 }
 0x1ee   : > { %s1445_s19 = smov %s1125_s20  ;;  %s1446_s20 = smov %s1204_s27 }
 0x1ef   : > { %s1447_s21 = smov %s1193_s24  ;;  %17 = sbr.rel (!%p15_p3) target bundleno = 3 (0x3), region = 75 }
 0x1f6   :  { %774 = vsyncpa [#allocation3], 1 }
 0x1f7   :  { %776 = vsyncpa [#allocation3 + $0x1], 1 }

</bundles_post_ra>
